<compile_context>
chip_gen: v7x
topology: tpu7x:2x2x1
jax: 0.10.0
libtpu: 0.0.40
codegen_flags: <defaults>
</compile_context>

<pallas_src>
import jax
import jax.numpy as jnp
from jax.experimental import pallas as pl
from jax.experimental.pallas import tpu as pltpu

BN_EPS = 1e-3


def _pick_hw_tile(hw: int) -> int:
    """Largest multiple-of-128 tile that divides HW, else the full extent."""
    for t in (2048, 1024, 512, 256, 128):
        if hw % t == 0:
            return t
    return hw  # full-extent block (always legal for a BlockSpec)


def _stats_kernel(x_ref, w_ref, sum_ref, sumsq_ref):
    # x_ref: (1, Cin, THW), w_ref: (Cout, Cin)
    # sum_ref / sumsq_ref: (Cout, 1) resident accumulators across the whole grid.
    @pl.when(jnp.logical_and(pl.program_id(0) == 0, pl.program_id(1) == 0))
    def _():
        sum_ref[...] = jnp.zeros_like(sum_ref)
        sumsq_ref[...] = jnp.zeros_like(sumsq_ref)

    y = jnp.dot(w_ref[...], x_ref[0], preferred_element_type=jnp.float32)
    sum_ref[...] += jnp.sum(y, axis=1, keepdims=True)
    sumsq_ref[...] += jnp.sum(y * y, axis=1, keepdims=True)


def _norm_kernel(x_ref, w_ref, scale_ref, shift_ref, o_ref):
    # Recompute y for this tile and apply the folded BN scale/shift.
    y = jnp.dot(w_ref[...], x_ref[0], preferred_element_type=jnp.float32)
    o_ref[0] = (y * scale_ref[...] + shift_ref[...]).astype(o_ref.dtype)


def conv1x1_bn(x_nchw, weight_oihw, gamma, beta, *, eps=BN_EPS, matmul_dtype=None):
    """Conv2d(Cin,Cout,1x1,bias=False) + BatchNorm2d(Cout) in training mode (batch stats).

    matmul_dtype: optionally cast x/w to jnp.bfloat16 for the MXU (recommended on
    v6e/v7x); accumulation, statistics and the affine stay in float32.
    """
    N, Cin, H, W = x_nchw.shape
    Cout = weight_oihw.shape[0]
    HW = H * W

    x3 = x_nchw.reshape(N, Cin, HW)           # free reshape, native NCHW layout
    w2 = weight_oihw.reshape(Cout, Cin)       # (Cout, Cin)
    if matmul_dtype is not None:
        x3 = x3.astype(matmul_dtype)
        w2 = w2.astype(matmul_dtype)

    thw = _pick_hw_tile(HW)
    n_hw = HW // thw
    grid = (N, n_hw)

    itemsize = int(jnp.dtype(x3.dtype).itemsize)
    out_itemsize = int(jnp.dtype(x_nchw.dtype).itemsize)
    flops = int(2 * N * HW * Cin * Cout)
    vmem_limit = 32 * 1024 * 1024  # fits every generation (v7x physical = 64 MiB)

    # ---------------- pass 1: per-channel batch statistics ----------------
    ch_sum, ch_sumsq = pl.pallas_call(
        _stats_kernel,
        out_shape=(
            jax.ShapeDtypeStruct((Cout, 1), jnp.float32),
            jax.ShapeDtypeStruct((Cout, 1), jnp.float32),
        ),
        grid=grid,
        in_specs=[
            pl.BlockSpec((1, Cin, thw), lambda n, t: (n, 0, t)),
            pl.BlockSpec((Cout, Cin), lambda n, t: (0, 0)),
        ],
        out_specs=(
            pl.BlockSpec((Cout, 1), lambda n, t: (0, 0)),
            pl.BlockSpec((Cout, 1), lambda n, t: (0, 0)),
        ),
        compiler_params=pltpu.CompilerParams(
            dimension_semantics=("arbitrary", "arbitrary"),
            vmem_limit_bytes=vmem_limit),
        cost_estimate=pl.CostEstimate(
            flops=flops, transcendentals=0,
            bytes_accessed=int(x3.size) * itemsize + int(w2.size) * itemsize + 2 * Cout * 4),
    )(x3, w2)

    # ---- fold BN (biased batch var, PyTorch train mode) + affine into scale/shift ----
    count = float(N * HW)
    mean = ch_sum / count
    var = jnp.maximum(ch_sumsq / count - mean * mean, 0.0)
    scale = gamma.reshape(Cout, 1).astype(jnp.float32) * jax.lax.rsqrt(var + eps)
    shift = beta.reshape(Cout, 1).astype(jnp.float32) - mean * scale
    # TODO(synk): running_mean/running_var update (momentum=0.01, unbiased var) is a
    # training-state side effect of nn.BatchNorm2d and is not part of the returned tensor.

    # ---------------- pass 2: normalize (recompute y, apply scale/shift) ----------------
    out3 = pl.pallas_call(
        _norm_kernel,
        out_shape=jax.ShapeDtypeStruct((N, Cout, HW), x_nchw.dtype),
        grid=grid,
        in_specs=[
            pl.BlockSpec((1, Cin, thw), lambda n, t: (n, 0, t)),
            pl.BlockSpec((Cout, Cin), lambda n, t: (0, 0)),
            pl.BlockSpec((Cout, 1), lambda n, t: (0, 0)),
            pl.BlockSpec((Cout, 1), lambda n, t: (0, 0)),
        ],
        out_specs=pl.BlockSpec((1, Cout, thw), lambda n, t: (n, 0, t)),
        compiler_params=pltpu.CompilerParams(
            dimension_semantics=("parallel", "parallel"),
            vmem_limit_bytes=vmem_limit),
        cost_estimate=pl.CostEstimate(
            flops=flops, transcendentals=0,
            bytes_accessed=int(x3.size) * itemsize + int(w2.size) * itemsize
            + int(N * Cout * HW) * out_itemsize),
    )(x3, w2, scale, shift)

    return out3.reshape(N, Cout, H, W)


def _reference(x_nchw, weight_oihw, gamma, beta):
    # pure-JAX reference: 1x1 conv + training-mode batchnorm (biased variance)
    y = jnp.einsum("nchw,oc->nohw", x_nchw, weight_oihw[:, :, 0, 0])
    mean = jnp.mean(y, axis=(0, 2, 3), keepdims=True)
    var = jnp.mean((y - mean) ** 2, axis=(0, 2, 3), keepdims=True)
    return (y - mean) / jnp.sqrt(var + BN_EPS) * gamma.reshape(1, -1, 1, 1) + beta.reshape(1, -1, 1, 1)


if __name__ == "__main__":
    key = jax.random.PRNGKey(0)
    kx, kw, kg, kb = jax.random.split(key, 4)

    Cin, Cout = 432, 72            # fixed by the module's conv weights
    N, H, W = 2, 16, 16            # small batch / spatial for the test

    x = jax.random.normal(kx, (N, Cin, H, W), dtype=jnp.float32)
    weight = jax.random.normal(kw, (Cout, Cin, 1, 1), dtype=jnp.float32) * 0.05
    gamma = 1.0 + 0.1 * jax.random.normal(kg, (Cout,), dtype=jnp.float32)
    beta = 0.1 * jax.random.normal(kb, (Cout,), dtype=jnp.float32)

    # f32 path (matches the PyTorch module numerics)
    out = conv1x1_bn(x, weight, gamma, beta)
    jax.block_until_ready(out)
    ref = _reference(x, weight, gamma, beta)
    assert out.shape == (N, Cout, H, W)
    assert jnp.allclose(out, ref, atol=1e-3, rtol=1e-3)

    # the module's exact shape (1, 432, 28, 28): exercises the full-extent HW tile path
    x2 = jax.random.normal(kx, (1, Cin, 28, 28), dtype=jnp.float32)
    out2 = conv1x1_bn(x2, weight, gamma, beta)
    jax.block_until_ready(out2)
    ref2 = _reference(x2, weight, gamma, beta)
    assert out2.shape == (1, Cout, 28, 28)
    assert jnp.allclose(out2, ref2, atol=1e-3, rtol=1e-3)

    # bf16 MXU path (recommended on v6e/v7x); stats and affine stay in f32
    out_bf16 = conv1x1_bn(x, weight, gamma, beta, matmul_dtype=jnp.bfloat16)
    jax.block_until_ready(out_bf16)
    assert jnp.allclose(out_bf16, ref, atol=5e-2, rtol=5e-2)

    print("KERNEL_OK")
</pallas_src>

<mosaic_0001>
module attributes {stable_mosaic.version = 11 : i64} {
  func.func @_stats_kernel(%arg0: i32, %arg1: i32, %arg2: memref<1x432x256xf32, #tpu.memory_space<vmem>>, %arg3: memref<72x432xf32, #tpu.memory_space<vmem>>, %arg4: memref<72x1xf32, #tpu.memory_space<vmem>>, %arg5: memref<72x1xf32, #tpu.memory_space<vmem>>) attributes {dimension_semantics = [#tpu.dimension_semantics<arbitrary>, #tpu.dimension_semantics<arbitrary>], iteration_bounds = array<i64: 2, 1>, scalar_prefetch = 0 : i64, scratch_operands = 0 : i64, tpu.core_type = #tpu.core_type<tc>, window_params = [{transform_indices = @transform_0, window_bounds = array<i64: 1, 432, 256>}, {pipeline_mode = #tpu.pipeline_mode<synchronous>, transform_indices = @transform_1, window_bounds = array<i64: 72, 432>}, {pipeline_mode = #tpu.pipeline_mode<synchronous>, transform_indices = @transform_2, window_bounds = array<i64: 72, 1>}, {pipeline_mode = #tpu.pipeline_mode<synchronous>, transform_indices = @transform_3, window_bounds = array<i64: 72, 1>}]} {
    %c0_i32 = arith.constant 0 : i32
    %0 = arith.cmpi eq, %arg0, %c0_i32 : i32
    %c0_i32_0 = arith.constant 0 : i32
    %1 = arith.cmpi eq, %arg1, %c0_i32_0 : i32
    %2 = arith.andi %0, %1 : i1
    %3 = arith.extui %2 : i1 to i32
    %c0_i32_1 = arith.constant 0 : i32
    %4 = arith.cmpi ne, %3, %c0_i32_1 : i32
    scf.if %4 {
      %cst_16 = arith.constant 0.000000e+00 : f32
      %20 = vector.broadcast %cst_16 : f32 to vector<72x1xf32>
      %c0_17 = arith.constant 0 : index
      %c0_18 = arith.constant 0 : index
      %21 = vector.load %arg4[%c0_17, %c0_18] : memref<72x1xf32, #tpu.memory_space<vmem>>, vector<72x1xf32>
      tpu.vector_store %arg4[%c0_17, %c0_18], %20 {strides = array<i32>} : memref<72x1xf32, #tpu.memory_space<vmem>>, vector<72x1xf32>,
      %cst_19 = arith.constant 0.000000e+00 : f32
      %22 = vector.broadcast %cst_19 : f32 to vector<72x1xf32>
      %c0_20 = arith.constant 0 : index
      %c0_21 = arith.constant 0 : index
      %23 = vector.load %arg5[%c0_20, %c0_21] : memref<72x1xf32, #tpu.memory_space<vmem>>, vector<72x1xf32>
      tpu.vector_store %arg5[%c0_20, %c0_21], %22 {strides = array<i32>} : memref<72x1xf32, #tpu.memory_space<vmem>>, vector<72x1xf32>,
    } else {
    }
    %c0 = arith.constant 0 : index
    %c0_2 = arith.constant 0 : index
    %5 = vector.load %arg3[%c0, %c0_2] : memref<72x432xf32, #tpu.memory_space<vmem>>, vector<72x432xf32>
    %c0_3 = arith.constant 0 : index
    %c0_4 = arith.constant 0 : index
    %c0_5 = arith.constant 0 : index
    %6 = vector.load %arg2[%c0_3, %c0_4, %c0_5] : memref<1x432x256xf32, #tpu.memory_space<vmem>>, vector<1x432x256xf32>
    %7 = vector.shape_cast %6 : vector<1x432x256xf32> to vector<432x256xf32>
    %cst = arith.constant dense<0.000000e+00> : vector<72x256xf32>
    %8 = tpu.matmul %5, %7, %cst {dimension_numbers = #tpu.dot_dimension_numbers<[1], [0], [0], [1], [0, 0, 1, 1], [], []>} : vector<72x432xf32>, vector<432x256xf32>, vector<72x256xf32> -> vector<72x256xf32>
    %c0_6 = arith.constant 0 : index
    %c0_7 = arith.constant 0 : index
    %9 = vector.load %arg4[%c0_6, %c0_7] : memref<72x1xf32, #tpu.memory_space<vmem>>, vector<72x1xf32>
    %cst_8 = arith.constant dense<0.000000e+00> : vector<72xf32>
    %10 = vector.multi_reduction <add>, %8, %cst_8 [1] : vector<72x256xf32> to vector<72xf32>
    %11 = vector.shape_cast %10 : vector<72xf32> to vector<72x1xf32>
    %12 = arith.addf %9, %11 : vector<72x1xf32>
    %c0_9 = arith.constant 0 : index
    %c0_10 = arith.constant 0 : index
    %13 = vector.load %arg4[%c0_9, %c0_10] : memref<72x1xf32, #tpu.memory_space<vmem>>, vector<72x1xf32>
    tpu.vector_store %arg4[%c0_9, %c0_10], %12 {strides = array<i32>} : memref<72x1xf32, #tpu.memory_space<vmem>>, vector<72x1xf32>,
    %c0_11 = arith.constant 0 : index
    %c0_12 = arith.constant 0 : index
    %14 = vector.load %arg5[%c0_11, %c0_12] : memref<72x1xf32, #tpu.memory_space<vmem>>, vector<72x1xf32>
    %15 = arith.mulf %8, %8 : vector<72x256xf32>
    %cst_13 = arith.constant dense<0.000000e+00> : vector<72xf32>
    %16 = vector.multi_reduction <add>, %15, %cst_13 [1] : vector<72x256xf32> to vector<72xf32>
    %17 = vector.shape_cast %16 : vector<72xf32> to vector<72x1xf32>
    %18 = arith.addf %14, %17 : vector<72x1xf32>
    %c0_14 = arith.constant 0 : index
    %c0_15 = arith.constant 0 : index
    %19 = vector.load %arg5[%c0_14, %c0_15] : memref<72x1xf32, #tpu.memory_space<vmem>>, vector<72x1xf32>
    tpu.vector_store %arg5[%c0_14, %c0_15], %18 {strides = array<i32>} : memref<72x1xf32, #tpu.memory_space<vmem>>, vector<72x1xf32>,
    return
  }
  func.func @transform_0(%arg0: i32, %arg1: i32) -> (i32, i32, i32) {
    %c0_i32 = arith.constant 0 : i32
    %c0_i32_0 = arith.constant 0 : i32
    return %arg0, %c0_i32, %arg1 : i32, i32, i32
  }
  func.func @transform_1(%arg0: i32, %arg1: i32) -> (i32, i32) {
    %c0_i32 = arith.constant 0 : i32
    %c0_i32_0 = arith.constant 0 : i32
    %c0_i32_1 = arith.constant 0 : i32
    return %c0_i32, %c0_i32_0 : i32, i32
  }
  func.func @transform_2(%arg0: i32, %arg1: i32) -> (i32, i32) {
    %c0_i32 = arith.constant 0 : i32
    %c0_i32_0 = arith.constant 0 : i32
    %c0_i32_1 = arith.constant 0 : i32
    return %c0_i32, %c0_i32_0 : i32, i32
  }
  func.func @transform_3(%arg0: i32, %arg1: i32) -> (i32, i32) {
    %c0_i32 = arith.constant 0 : i32
    %c0_i32_0 = arith.constant 0 : i32
    %c0_i32_1 = arith.constant 0 : i32
    return %c0_i32, %c0_i32_0 : i32, i32
  }
}

</mosaic_0001>

<bundles_post_ra>
// kernel: tpu_custom_call.1
= control target key start
LH: loop header
LB: loop body
LE: loop exit
PB: predicated region body
PF: predicated region fallthrough
CT: control target
= control target key end

     0   :  { %9 = vsyncpa [#allocation3], 0  ;;  %s1667_s0 = inlined_call_operand.hbm [shape: f32[2,432,256], index: 0, kind: input, shape index: {}]   ;;  %s1668_s1 = inlined_call_operand.hbm [shape: f32[72,432], index: 1, kind: input, shape index: {}]   ;;  %s1669_s2 = inlined_call_operand.vmem [shape: f32[72,1], index: 2, kind: output, shape index: {0}]   ;;  %s1670_s3 = inlined_call_operand.vmem [shape: f32[72,1], index: 3, kind: output, shape index: {1}]  }
   0x1   :  { %11 = vsyncpa [#allocation3 + $0x1], 0 }
   0x2   :  { %12 = vsyncpa [#allocation5], 0  ;;  %s1196_s12 = smov 0   ;;  %s1198_s13 = smov 0  }
   0x3   :  { %s1200_s14 = smov 0   ;;  %s1202_s15 = smov 0  }
   0x4   :  { %s1204_s16 = smov 0   ;;  %s1206_s17 = smov 0  }
   0x5 LB: > { %s835_s18 = sadd.s32 4294967295, %s1167_s17   ;;  %p52_p0 = scmp.ne.s32.totalorder %s1151_s13, %s1147_s12  ;;  %s1167_s17 = sphi %s1206_s17, %s18_s17   ;;  %s1163_s16 = sphi %s1204_s16, %s1687_s16   ;;  %s1159_s15 = sphi %s1202_s15, %s1686_s15   ;;  %s1155_s14 = sphi %s1200_s14, %s1685_s14   ;;  %s1151_s13 = sphi %s1198_s13, %s1684_s13   ;;  %s1147_s12 = sphi %s1196_s12, %s1683_s12  }
   0x6   : > { %p1226_p1 = scmp.eq.s32.totalorder %s835_s18, 0  ;;  %p836_p2 = scmp.ge.s32.totalorder %s1167_s17, 1 }
   0x7   : > { %p126_p3 = scmp.lt.s32.totalorder %s1167_s17, 3  ;;  %s1169_s22 = smov [#allocation4]  }
   0x8   : > { %s1675_s19 = scalar_select %p1226_p1, 1, 0 }
   0x9   : > { %p1234_p4 = por %p1226_p1, %p52_p0  ;;  %p1238_p5 = pnand %p836_p2, %p126_p3 }
   0xa   : > { %s138_s23 = sshll.u32 %s1169_s22, 4  ;;  %s30_s25 = sadd.s32 1, %s1163_s16  ;;  %s139_s23 = int_to_ptr.vmem [resolvable:$true] %s138_s23 }
   0xb   : > { %s1676_s20 = scalar_select %p1234_p4, 1, 0 }
   0xc   : > { %s1677_s21 = scalar_select %p1238_p5, 1, 0 }
   0xd   : > { %p990_p6 = pneg %p1238_p5  ;;  %s1055_s28 = scalar_lea.hbm %s1668_s1, 4608 }
   0xe   : > { %p1056_p8 = scmp.ne.s32.totalorder %s1668_s1, %s1055_s28  ;;  %p1062_p12 = scmp.lt.u32.totalorder %s1055_s28, %s1668_s1 }
   0xf   : > { %p1246_p7 = pnand %p990_p6, %p1226_p1 }
  0x11   : > { %p1057_p9 = pneg %p1246_p7 }
  0x13   : > { %p1058_p10 = pnand %p1057_p9, %p1056_p8 }
  0x15   : > { %p1059_p11 = pneg %p1058_p10 }
  0x17   : > { %p1064_p13 = pnand %p1062_p12, %p1059_p11 }
  0x19   : > { %1067 = shalt.err (!%p1064_p13)
}
  0x1a   : > { %s1068_s6 = scalar_lea.vmem %s139_s23, 4608  ;;  %p1076_p6 = scmp.lt.s32.totalorder %s139_s23, %s139_s23 }
  0x1b   : > { %p1069_p0 = scmp.ne.s32.totalorder %s139_s23, %s1068_s6  ;;  %p1077_p1 = scmp.lt.s32.totalorder %s1068_s6, %s1068_s6 }
  0x1d   : > { %p1071_p2 = pnand %p1069_p0, %p1057_p9  ;;  %p1078_p4 = por %p1077_p1, %p1076_p6 }
  0x1f   : > { %p1072_p3 = pneg %p1071_p2 }
  0x21   : > { %p1079_p5 = pnand %p1078_p4, %p1072_p3 }
  0x23   : > { %1082 = shalt.err (!%p1079_p5)
}
  0x24   : > { %s1170_s7 = smov 512   ;;  %s1171_s8 = smov 32  }
  0x25   : > { %993 = dma.hbm_to_vmem [thread:$0]  (!%p1246_p7), %s1668_s1, 4608, %s139_s23, [#allocation5], %s1170_s7, %s1170_s7, %s1171_s8  }
  0x26   : > { %p32_p1 = scmp.ge.s32.totalorder %s30_s25, 2  ;;  %s39_s11 = sadd.s32 1, %s1155_s14 }
  0x27   : > { %p46_p4 = scmp.ne.s32.totalorder %s1155_s14, %s1151_s13  ;;  %p47_p5 = scmp.eq.s32.totalorder %s1167_s17, 0 }
  0x28   : > { %s1689_s25 = smov (%p32_p1, %s30_s25), 0  ;;  %p999_p9 = scmp.lt.s32.totalorder %s1167_s17, 2 }
  0x29   : > { %p48_p8 = por %p47_p5, %p46_p4  ;;  %s34_s12 = ssub.s32 %s1163_s16, %s1689_s25 }
  0x2a   : > { %s152_s18 = sand.u32 1, %s1155_s14   ;;  %p37_p10 = scmp.eq.s32.totalorder %s34_s12, 0 }
  0x2b   : > { %s981_s22 = smul.u32 864, %s152_s18  ;;  %p1277_p11 = pnand %p999_p9, %p48_p8 }
  0x2c   : > { %s1282_s23 = scalar_select %p37_p10, %s1155_s14, %s39_s11  }
  0x2d   : > { %s982_s24 = smul.u32 13824, %s1163_s16  ;;  %s156_s27 = scalar_lea.vmem [#allocation2], %s981_s22 }
  0x2e   : > { %s165_s28 = sshll.u32 %s156_s27, 4  ;;  %s1292_s5 = scalar_lea.sflag [#allocation3], %s152_s18  ;;  %s1290_s28 = int_to_ptr.vmem [resolvable:$true] %s165_s28 }
  0x2f   : > { %s1288_s4 = scalar_lea.hbm %s1667_s0, %s982_s24  ;;  %p1085_p12 = pneg %p1277_p11 }
  0x30   : > { %s1083_s6 = scalar_lea.hbm %s1288_s4, 13824  ;;  %s1088_s9 = scalar_lea.hbm %s1667_s0, 27648 }
  0x31   : > { %p1084_p7 = scmp.ne.s32.totalorder %s1288_s4, %s1083_s6  ;;  %p1089_p2 = scmp.lt.u32.totalorder %s1288_s4, %s1667_s0 }
  0x32   : > { %p1090_p3 = scmp.lt.u32.totalorder %s1088_s9, %s1083_s6  ;;  %p1092_p1 = scmp.lt.u32.totalorder %s1083_s6, %s1288_s4 }
  0x33   : > { %p1086_p13 = pnand %p1085_p12, %p1084_p7 }
  0x34   : > { %p1091_p6 = por %p1090_p3, %p1089_p2 }
  0x35   : > { %p1087_p0 = pneg %p1086_p13 }
  0x36   : > { %p1093_p4 = por %p1092_p1, %p1091_p6 }
  0x38   : > { %p1094_p5 = pnand %p1093_p4, %p1087_p0 }
  0x3a   : > { %1097 = shalt.err (!%p1094_p5)
}
  0x3b   : > { %s1098_s12 = scalar_lea.vmem %s1290_s28, 13824  ;;  %s1172_s18 = smov [#allocation2]  }
  0x3c   : > { %p1099_p8 = scmp.ne.s32.totalorder %s1290_s28, %s1098_s12  ;;  %s1103_s22 = sshll.u32 %s1172_s18, 4  ;;  %s1104_s22 = int_to_ptr.vmem [resolvable:$false] %s1103_s22 }
  0x3d   : > { %s1105_s24 = scalar_lea.vmem %s1104_s22, 27648  ;;  %p1106_p7 = scmp.lt.s32.totalorder %s1290_s28, %s1104_s22 }
  0x3e   : > { %p1101_p9 = pnand %p1099_p8, %p1085_p12  ;;  %p1107_p13 = scmp.lt.s32.totalorder %s1105_s24, %s1098_s12 }
  0x40   : > { %p1102_p10 = pneg %p1101_p9  ;;  %p1108_p2 = por %p1107_p13, %p1106_p7 }
  0x42   : > { %p1109_p3 = pnand %p1108_p2, %p1102_p10 }
  0x44   : > { %1112 = shalt.err (!%p1109_p3)
}
  0x45   : > { %s1173_s27 = smov 256   ;;  %s1174_s29 = smov 16  }
  0x46   : > { %997 = dma.hbm_to_vmem [thread:$0]  (!%p1277_p11), %s1288_s4, 13824, %s1290_s28, %s1292_s5, %s1173_s27, %s1173_s27, %s1174_s29  }
  0x47   : > { %p1680_p12 = scmp.ne.s32.totalorder %s1677_s21, 0 }
  0x48   : > { %s179_s30 = sand.u32 (!%p1680_p12), 1, %s1151_s13   ;;  %p1681_p0 = scmp.ne.s32.totalorder (!%p1680_p12), %s1676_s20, 0 }
  0x49   : > { %177 = sbr.rel (%p1680_p12) target bundleno = 560 (0x230), region = 28  ;;  %s180_s7 = scalar_lea.sflag (!%p1680_p12), [#allocation3], %s179_s30 }
  0x4a   : > { %s983_s6 = smul.u32 (!%p1680_p12), 864, %s179_s30 }
  0x4c   : > { %s1323_s8 = scalar_lea.vmem (!%p1680_p12), [#allocation2], %s983_s6 }
  0x50   : > { %1138 = dma.done.wait (%p1681_p0), %s180_s7, 13824  }
  0x51   : > { %1140 = vsyncadd (%p1681_p0), %s180_s7, 4294953472  ;;  %p1682_p6 = scmp.ne.s32.totalorder %s1675_s19, 0 }
  0x53   : > { %1142 = dma.done.wait (%p1682_p6), [#allocation5], 4608  }
  0x54   : > { %1144 = vsyncadd (%p1682_p6), [#allocation5], 4294962688  ;;  %p206_p11 = scmp.eq.s32.totalorder %s1159_s15, 0 }
  0x55   : > { %vm212_vm0 = vcmask (%p206_p11), 7168   ;;  %v1175_v0 = vmov (%p206_p11), 0.0  }
  0x56   : > { %211 = sbr.rel (!%p206_p11) target bundleno = 95 (0x5f), region = 40  ;;  %213 = vst.msk [vmem:[%s1669_s2] sm:$0xff] (%p206_p11), %vm212_vm0, %v1175_v0  ;;  %214 = vst.msk [vmem:[%s1669_s2 + $0x8] sm:$0xff] (%p206_p11), %vm212_vm0, %v1175_v0 }
  0x57   : > { %215 = vst.msk [vmem:[%s1669_s2 + $0x10] sm:$0xff] (%p206_p11), %vm212_vm0, %v1175_v0  ;;  %216 = vst.msk [vmem:[%s1669_s2 + $0x18] sm:$0xff] (%p206_p11), %vm212_vm0, %v1175_v0 }
  0x58   : > { %217 = vst.msk [vmem:[%s1669_s2 + $0x20] sm:$0xff] (%p206_p11), %vm212_vm0, %v1175_v0  ;;  %218 = vst.msk [vmem:[%s1669_s2 + $0x28] sm:$0xff] (%p206_p11), %vm212_vm0, %v1175_v0 }
  0x59   : > { %219 = vst.msk [vmem:[%s1669_s2 + $0x30] sm:$0xff] (%p206_p11), %vm212_vm0, %v1175_v0  ;;  %220 = vst.msk [vmem:[%s1669_s2 + $0x38] sm:$0xff] (%p206_p11), %vm212_vm0, %v1175_v0 }
  0x5a   : > { %221 = vst.msk [vmem:[%s1669_s2 + $0x40] sm:$0xff] (%p206_p11), %vm212_vm0, %v1175_v0  ;;  %222 = vst.msk [vmem:[%s1670_s3] sm:$0xff] (%p206_p11), %vm212_vm0, %v1175_v0 }
  0x5b   : > { %223 = vst.msk [vmem:[%s1670_s3 + $0x8] sm:$0xff] (%p206_p11), %vm212_vm0, %v1175_v0  ;;  %224 = vst.msk [vmem:[%s1670_s3 + $0x10] sm:$0xff] (%p206_p11), %vm212_vm0, %v1175_v0 }
  0x5c   : > { %225 = vst.msk [vmem:[%s1670_s3 + $0x18] sm:$0xff] (%p206_p11), %vm212_vm0, %v1175_v0  ;;  %226 = vst.msk [vmem:[%s1670_s3 + $0x20] sm:$0xff] (%p206_p11), %vm212_vm0, %v1175_v0 }
  0x5d   : > { %227 = vst.msk [vmem:[%s1670_s3 + $0x28] sm:$0xff] %vm212_vm0, %v1175_v0  ;;  %228 = vst.msk [vmem:[%s1670_s3 + $0x30] sm:$0xff] %vm212_vm0, %v1175_v0 }
  0x5e   : > { %229 = vst.msk [vmem:[%s1670_s3 + $0x38] sm:$0xff] %vm212_vm0, %v1175_v0  ;;  %230 = vst.msk [vmem:[%s1670_s3 + $0x40] sm:$0xff] %vm212_vm0, %v1175_v0 }
  0x5f PF: > { %v268_v1 = vld [vmem:[%s1323_s8 + $0x8] sm:$0xff]  ;;  %v270_v2 = vld [vmem:[%s1323_s8 + $0x18] sm:$0xff]  ;;  %v267_v3 = vld [vmem:[%s1323_s8] sm:$0xff]  ;;  %vm375_vm1 = vcmask 392192   ;;  %vm686_vm2 = vcmask 7168  }
  0x60   : > { %v855_v4 = vpack.c.bf16 %v270_v2, %v268_v1  ;;  %v269_v5 = vld [vmem:[%s1323_s8 + $0x10] sm:$0xff]  ;;  %v272_v6 = vld [vmem:[%s1323_s8 + $0x28] sm:$0xff]  ;;  %v274_v7 = vld [vmem:[%s1323_s8 + $0x38] sm:$0xff] }
  0x61   : > { %v857_v8 = vpack.c.bf16 %v269_v5, %v267_v3  ;;  %v859_v9 = vpack.c.bf16 %v274_v7, %v272_v6  ;;  %v271_v10 = vld [vmem:[%s1323_s8 + $0x20] sm:$0xff]  ;;  %v273_v11 = vld [vmem:[%s1323_s8 + $0x30] sm:$0xff]  ;;  %v276_v12 = vld [vmem:[%s1323_s8 + $0x48] sm:$0xff] }
  0x62   : > { %856 = vmatprep.subr.bf16.mxu1 %v855_v4  ;;  %v278_v13 = vld [vmem:[%s1323_s8 + $0x58] sm:$0xff]  ;;  %v861_v14 = vpack.c.bf16 %v273_v11, %v271_v10  ;;  %v275_v16 = vld [vmem:[%s1323_s8 + $0x40] sm:$0xff]  ;;  %v277_v17 = vld [vmem:[%s1323_s8 + $0x50] sm:$0xff] }
  0x63   : > { %858 = vmatpush1.bf16.msra.mxu1 %v857_v8  ;;  %v863_v15 = vpack.c.bf16 %v278_v13, %v276_v12  ;;  %v280_v18 = vld [vmem:[%s1323_s8 + $0x68] sm:$0xff]  ;;  %v282_v19 = vld [vmem:[%s1323_s8 + $0x78] sm:$0xff]  ;;  %v865_v22 = vpack.c.bf16 %v277_v17, %v275_v16  ;;  %v279_v23 = vld [vmem:[%s1323_s8 + $0x60] sm:$0xff] }
  0x64   : > { %860 = vmatprep.subr.bf16.mxu1 %v859_v9  ;;  %v332_v20 = vld [vmem:[%s1323_s8 + $0x208] sm:$0xff]  ;;  %v334_v21 = vld [vmem:[%s1323_s8 + $0x218] sm:$0xff]  ;;  %v331_v25 = vld [vmem:[%s1323_s8 + $0x200] sm:$0xff]  ;;  %v867_v27 = vpack.c.bf16 %v282_v19, %v280_v18 }
  0x65   : > { %v919_v24 = vpack.c.bf16 %v334_v21, %v332_v20  ;;  %v333_v26 = vld [vmem:[%s1323_s8 + $0x210] sm:$0xff]  ;;  %v336_v30 = vld [vmem:[%s1323_s8 + $0x228] sm:$0xff]  ;;  %v338_v31 = vld [vmem:[%s1323_s8 + $0x238] sm:$0xff] }
  0x66   : > { %v281_v28 = vld [vmem:[%s1323_s8 + $0x70] sm:$0xff]  ;;  %v921_v29 = vpack.c.bf16 %v333_v26, %v331_v25  ;;  %v284_v32 = vld [vmem:[%s1323_s8 + $0x88] sm:$0xff]  ;;  %v286_v33 = vld [vmem:[%s1323_s8 + $0x98] sm:$0xff]  ;;  %v923_v34 = vpack.c.bf16 %v338_v31, %v336_v30 }
  0x67   : > { %862 = vmatpush1.bf16.msra.mxu1 %v861_v14  ;;  %920 = vmatprep.subr.bf16.mxu0 %v919_v24  ;;  %v335_v35 = vld [vmem:[%s1323_s8 + $0x220] sm:$0xff]  ;;  %v337_v36 = vld [vmem:[%s1323_s8 + $0x230] sm:$0xff]  ;;  %v869_v37 = vpack.c.bf16 %v281_v28, %v279_v23  ;;  %v340_v40 = vld [vmem:[%s1323_s8 + $0x248] sm:$0xff]  ;;  %v871_v42 = vpack.c.bf16 %v286_v33, %v284_v32 }
  0x68   : > { %864 = vmatprep.subr.bf16.mxu1 %v863_v15  ;;  %922 = vmatpush1.bf16.msra.mxu0 %v921_v29  ;;  %v283_v38 = vld [vmem:[%s1323_s8 + $0x80] sm:$0xff]  ;;  %v925_v39 = vpack.c.bf16 %v337_v36, %v335_v35  ;;  %v342_v41 = vld [vmem:[%s1323_s8 + $0x258] sm:$0xff]  ;;  %v285_v43 = vld [vmem:[%s1323_s8 + $0x90] sm:$0xff] }
  0x69   : > { %924 = vmatprep.subr.bf16.mxu0 %v923_v34  ;;  %v927_v44 = vpack.c.bf16 %v342_v41, %v340_v40  ;;  %v339_v45 = vld [vmem:[%s1323_s8 + $0x240] sm:$0xff]  ;;  %v341_v46 = vld [vmem:[%s1323_s8 + $0x250] sm:$0xff]  ;;  %v288_v47 = vld [vmem:[%s1323_s8 + $0xa8] sm:$0xff]  ;;  %v873_v52 = vpack.c.bf16 %v285_v43, %v283_v38 }
  0x6a   : > { %v290_v48 = vld [vmem:[%s1323_s8 + $0xb8] sm:$0xff]  ;;  %v344_v49 = vld [vmem:[%s1323_s8 + $0x268] sm:$0xff]  ;;  %v929_v50 = vpack.c.bf16 %v341_v46, %v339_v45  ;;  %v287_v53 = vld [vmem:[%s1323_s8 + $0xa0] sm:$0xff] }
  0x6b   : > { %866 = vmatpush1.bf16.msra.mxu1 %v865_v22  ;;  %v346_v51 = vld [vmem:[%s1323_s8 + $0x278] sm:$0xff]  ;;  %v343_v55 = vld [vmem:[%s1323_s8 + $0x260] sm:$0xff]  ;;  %v345_v56 = vld [vmem:[%s1323_s8 + $0x270] sm:$0xff]  ;;  %v875_v57 = vpack.c.bf16 %v290_v48, %v288_v47 }
  0x6c   : > { %868 = vmatprep.subr.bf16.mxu1 %v867_v27  ;;  %926 = vmatpush1.bf16.msra.mxu0 %v925_v39  ;;  %v931_v54 = vpack.c.bf16 %v346_v51, %v344_v49  ;;  %v289_v58 = vld [vmem:[%s1323_s8 + $0xb0] sm:$0xff]  ;;  %v348_v59 = vld [vmem:[%s1323_s8 + $0x288] sm:$0xff]  ;;  %v350_v60 = vld [vmem:[%s1323_s8 + $0x298] sm:$0xff]  ;;  %v933_v63 = vpack.c.bf16 %v345_v56, %v343_v55 }
  0x6d   : > { %928 = vmatprep.subr.bf16.mxu0 %v927_v44  ;;  %v292_v61 = vld [vmem:[%s1323_s8 + $0xc8] sm:$0xff]  ;;  %v294_v62 = vld [vmem:[%s1323_s8 + $0xd8] sm:$0xff]  ;;  %v877_v0 = vpack.c.bf16 %v289_v58, %v287_v53  ;;  %v291_v1 = vld [vmem:[%s1323_s8 + $0xc0] sm:$0xff]  ;;  %v935_v2 = vpack.c.bf16 %v350_v60, %v348_v59 }
  0x6e   : > { %v347_v3 = vld [vmem:[%s1323_s8 + $0x280] sm:$0xff]  ;;  %v349_v4 = vld [vmem:[%s1323_s8 + $0x290] sm:$0xff]  ;;  %v879_v5 = vpack.c.bf16 %v294_v62, %v292_v61  ;;  %v352_v7 = vld [vmem:[%s1323_s8 + $0x2a8] sm:$0xff] }
  0x6f   : > { %870 = vmatpush1.bf16.msra.mxu1 %v869_v37  ;;  %v293_v6 = vld [vmem:[%s1323_s8 + $0xd0] sm:$0xff]  ;;  %v354_v8 = vld [vmem:[%s1323_s8 + $0x2b8] sm:$0xff]  ;;  %v296_v9 = vld [vmem:[%s1323_s8 + $0xe8] sm:$0xff]  ;;  %v937_v11 = vpack.c.bf16 %v349_v4, %v347_v3 }
  0x70   : > { %872 = vmatprep.subr.bf16.mxu1 %v871_v42  ;;  %930 = vmatpush1.bf16.msra.mxu0 %v929_v50  ;;  %v298_v10 = vld [vmem:[%s1323_s8 + $0xf8] sm:$0xff]  ;;  %v881_v12 = vpack.c.bf16 %v293_v6, %v291_v1  ;;  %v295_v13 = vld [vmem:[%s1323_s8 + $0xe0] sm:$0xff]  ;;  %v939_v14 = vpack.c.bf16 %v354_v8, %v352_v7  ;;  %v353_v16 = vld [vmem:[%s1323_s8 + $0x2b0] sm:$0xff] }
  0x71   : > { %932 = vmatprep.subr.bf16.mxu0 %v931_v54  ;;  %v351_v15 = vld [vmem:[%s1323_s8 + $0x2a0] sm:$0xff]  ;;  %v883_v17 = vpack.c.bf16 %v298_v10, %v296_v9  ;;  %v297_v18 = vld [vmem:[%s1323_s8 + $0xf0] sm:$0xff]  ;;  %v356_v19 = vld [vmem:[%s1323_s8 + $0x2c8] sm:$0xff] }
  0x72   : > { %v358_v20 = vld [vmem:[%s1323_s8 + $0x2d8] sm:$0xff]  ;;  %v300_v21 = vld [vmem:[%s1323_s8 + $0x108] sm:$0xff]  ;;  %v941_v23 = vpack.c.bf16 %v353_v16, %v351_v15  ;;  %v885_v24 = vpack.c.bf16 %v297_v18, %v295_v13  ;;  %v299_v25 = vld [vmem:[%s1323_s8 + $0x100] sm:$0xff] }
  0x73   : > { %874 = vmatpush1.bf16.msra.mxu1 %v873_v52  ;;  %v302_v22 = vld [vmem:[%s1323_s8 + $0x118] sm:$0xff]  ;;  %v943_v26 = vpack.c.bf16 %v358_v20, %v356_v19  ;;  %v355_v27 = vld [vmem:[%s1323_s8 + $0x2c0] sm:$0xff]  ;;  %v357_v28 = vld [vmem:[%s1323_s8 + $0x2d0] sm:$0xff] }
  0x74   : > { %876 = vmatprep.subr.bf16.mxu1 %v875_v57  ;;  %934 = vmatpush1.bf16.msra.mxu0 %v933_v63  ;;  %v887_v29 = vpack.c.bf16 %v302_v22, %v300_v21  ;;  %v301_v30 = vld [vmem:[%s1323_s8 + $0x110] sm:$0xff]  ;;  %v360_v31 = vld [vmem:[%s1323_s8 + $0x2e8] sm:$0xff]  ;;  %v362_v32 = vld [vmem:[%s1323_s8 + $0x2f8] sm:$0xff]  ;;  %v945_v35 = vpack.c.bf16 %v357_v28, %v355_v27 }
  0x75   : > { %936 = vmatprep.subr.bf16.mxu0 %v935_v2  ;;  %v304_v33 = vld [vmem:[%s1323_s8 + $0x128] sm:$0xff]  ;;  %v306_v34 = vld [vmem:[%s1323_s8 + $0x138] sm:$0xff]  ;;  %v889_v36 = vpack.c.bf16 %v301_v30, %v299_v25  ;;  %v303_v37 = vld [vmem:[%s1323_s8 + $0x120] sm:$0xff]  ;;  %v947_v38 = vpack.c.bf16 %v362_v32, %v360_v31 }
  0x76   : > { %v359_v39 = vld [vmem:[%s1323_s8 + $0x2e0] sm:$0xff]  ;;  %v361_v40 = vld [vmem:[%s1323_s8 + $0x2f0] sm:$0xff]  ;;  %v891_v41 = vpack.c.bf16 %v306_v34, %v304_v33  ;;  %v364_v43 = vld [vmem:[%s1323_s8 + $0x308] sm:$0xff] }
  0x77   : > { %878 = vmatpush1.bf16.msra.mxu1 %v877_v0  ;;  %v305_v42 = vld [vmem:[%s1323_s8 + $0x130] sm:$0xff]  ;;  %v366_v44 = vld [vmem:[%s1323_s8 + $0x318] sm:$0xff]  ;;  %v308_v45 = vld [vmem:[%s1323_s8 + $0x148] sm:$0xff]  ;;  %v949_v48 = vpack.c.bf16 %v361_v40, %v359_v39 }
  0x78   : > { %880 = vmatprep.subr.bf16.mxu1 %v879_v5  ;;  %938 = vmatpush1.bf16.msra.mxu0 %v937_v11  ;;  %v310_v46 = vld [vmem:[%s1323_s8 + $0x158] sm:$0xff]  ;;  %v307_v47 = vld [vmem:[%s1323_s8 + $0x140] sm:$0xff]  ;;  %v893_v50 = vpack.c.bf16 %v305_v42, %v303_v37  ;;  %v951_v51 = vpack.c.bf16 %v366_v44, %v364_v43  ;;  %v365_v52 = vld [vmem:[%s1323_s8 + $0x310] sm:$0xff] }
  0x79   : > { %940 = vmatprep.subr.bf16.mxu0 %v939_v14  ;;  %v363_v49 = vld [vmem:[%s1323_s8 + $0x300] sm:$0xff]  ;;  %v234_v53 = vld [vmem:[#allocation4 + $0x18] sm:$0xff]  ;;  %v232_v54 = vld [vmem:[#allocation4 + $0x8] sm:$0xff]  ;;  %v895_v55 = vpack.c.bf16 %v310_v46, %v308_v45 }
  0x7a   : > { %v309_v56 = vld [vmem:[%s1323_s8 + $0x150] sm:$0xff]  ;;  %v368_v57 = vld [vmem:[%s1323_s8 + $0x328] sm:$0xff]  ;;  %v370_v58 = vld [vmem:[%s1323_s8 + $0x338] sm:$0xff]  ;;  %843 = vmatprep.mubr.msk.f32.mxu0 %vm375_vm1, %v234_v53  ;;  %467 = vmatprep.mubr.f32.mxu1 %v232_v54  ;;  %v953_v61 = vpack.c.bf16 %v365_v52, %v363_v49 }
  0x7b   : > { %882 = vmatpush1.bf16.msra.mxu1 %v881_v12  ;;  %v312_v59 = vld [vmem:[%s1323_s8 + $0x168] sm:$0xff]  ;;  %v314_v60 = vld [vmem:[%s1323_s8 + $0x178] sm:$0xff]  ;;  %v897_v62 = vpack.c.bf16 %v309_v56, %v307_v47  ;;  %v311_v63 = vld [vmem:[%s1323_s8 + $0x160] sm:$0xff]  ;;  %v955_v0 = vpack.c.bf16 %v370_v58, %v368_v57 }
  0x7c   : > { %884 = vmatprep.subr.bf16.mxu1 %v883_v17  ;;  %942 = vmatpush1.bf16.msra.mxu0 %v941_v23  ;;  %v367_v1 = vld [vmem:[%s1323_s8 + $0x320] sm:$0xff]  ;;  %v369_v2 = vld [vmem:[%s1323_s8 + $0x330] sm:$0xff]  ;;  %v899_v3 = vpack.c.bf16 %v314_v60, %v312_v59  ;;  %v372_v5 = vld [vmem:[%s1323_s8 + $0x348] sm:$0xff] }
  0x7d   : > { %944 = vmatprep.subr.bf16.mxu0 %v943_v26  ;;  %v313_v4 = vld [vmem:[%s1323_s8 + $0x170] sm:$0xff]  ;;  %v374_v6 = vld [vmem:[%s1323_s8 + $0x358] sm:$0xff]  ;;  %v316_v7 = vld [vmem:[%s1323_s8 + $0x188] sm:$0xff]  ;;  %v957_v9 = vpack.c.bf16 %v369_v2, %v367_v1 }
  0x7e   : > { %v318_v8 = vld [vmem:[%s1323_s8 + $0x198] sm:$0xff]  ;;  %v901_v10 = vpack.c.bf16 %v313_v4, %v311_v63  ;;  %v959_v11 = vpack.c.bf16 %v374_v6, %v372_v5  ;;  %v371_v12 = vld [vmem:[%s1323_s8 + $0x340] sm:$0xff]  ;;  %v373_v13 = vld [vmem:[%s1323_s8 + $0x350] sm:$0xff] }
  0x7f   : > { %886 = vmatpush1.bf16.msra.mxu1 %v885_v24  ;;  %v903_v14 = vpack.c.bf16 %v318_v8, %v316_v7  ;;  %v315_v15 = vld [vmem:[%s1323_s8 + $0x180] sm:$0xff]  ;;  %v317_v16 = vld [vmem:[%s1323_s8 + $0x190] sm:$0xff]  ;;  %v320_v17 = vld [vmem:[%s1323_s8 + $0x1a8] sm:$0xff]  ;;  %v961_v19 = vpack.c.bf16 %v373_v13, %v371_v12 }
  0x80   : > { %888 = vmatprep.subr.bf16.mxu1 %v887_v29  ;;  %946 = vmatpush1.bf16.msra.mxu0 %v945_v35  ;;  %v322_v18 = vld [vmem:[%s1323_s8 + $0x1b8] sm:$0xff]  ;;  %v905_v20 = vpack.c.bf16 %v317_v16, %v315_v15  ;;  %v319_v22 = vld [vmem:[%s1323_s8 + $0x1a0] sm:$0xff]  ;;  %v321_v23 = vld [vmem:[%s1323_s8 + $0x1b0] sm:$0xff] }
  0x81   : > { %948 = vmatprep.subr.bf16.mxu0 %v947_v38  ;;  %v907_v21 = vpack.c.bf16 %v322_v18, %v320_v17  ;;  %v324_v24 = vld [vmem:[%s1323_s8 + $0x1c8] sm:$0xff]  ;;  %v326_v25 = vld [vmem:[%s1323_s8 + $0x1d8] sm:$0xff]  ;;  %v233_v26 = vld [vmem:[#allocation4 + $0x10] sm:$0xff]  ;;  %v909_v27 = vpack.c.bf16 %v321_v23, %v319_v22 }
  0x82   : > { %v238_v28 = vld [vmem:[#allocation4 + $0x38] sm:$0xff]  ;;  %v911_v29 = vpack.c.bf16 %v326_v25, %v324_v24  ;;  %v323_v30 = vld [vmem:[%s1323_s8 + $0x1c0] sm:$0xff]  ;;  %v325_v31 = vld [vmem:[%s1323_s8 + $0x1d0] sm:$0xff] }
  0x83   : > { %890 = vmatpush1.bf16.msra.mxu1 %v889_v36  ;;  %v328_v32 = vld [vmem:[%s1323_s8 + $0x1e8] sm:$0xff]  ;;  %v330_v33 = vld [vmem:[%s1323_s8 + $0x1f8] sm:$0xff]  ;;  %v237_v34 = vld [vmem:[#allocation4 + $0x30] sm:$0xff]  ;;  %v913_v35 = vpack.c.bf16 %v325_v31, %v323_v30 }
  0x84   : > { %892 = vmatprep.subr.bf16.mxu1 %v891_v41  ;;  %950 = vmatpush1.bf16.msra.mxu0 %v949_v48  ;;  %v242_v36 = vld [vmem:[#allocation4 + $0x58] sm:$0xff]  ;;  %v915_v37 = vpack.c.bf16 %v330_v33, %v328_v32  ;;  %v327_v38 = vld [vmem:[%s1323_s8 + $0x1e0] sm:$0xff]  ;;  %v329_v39 = vld [vmem:[%s1323_s8 + $0x1f0] sm:$0xff] }
  0x85   : > { %952 = vmatprep.subr.bf16.mxu0 %v951_v51  ;;  %v241_v40 = vld [vmem:[#allocation4 + $0x50] sm:$0xff]  ;;  %v917_v41 = vpack.c.bf16 %v329_v39, %v327_v38  ;;  %v246_v42 = vld [vmem:[#allocation4 + $0x78] sm:$0xff]  ;;  %v231_v44 = vld [vmem:[#allocation4] sm:$0xff] }
  0x86   : > { %v245_v43 = vld [vmem:[#allocation4 + $0x70] sm:$0xff]  ;;  %v250_v45 = vld [vmem:[#allocation4 + $0x98] sm:$0xff]  ;;  %v236_v46 = vld [vmem:[#allocation4 + $0x28] sm:$0xff] }
  0x87   : > { %894 = vmatpush1.bf16.msra.mxu1 %v893_v50  ;;  %v249_v47 = vld [vmem:[#allocation4 + $0x90] sm:$0xff]  ;;  %v235_v48 = vld [vmem:[#allocation4 + $0x20] sm:$0xff]  ;;  %v254_v49 = vld [vmem:[#allocation4 + $0xb8] sm:$0xff] }
  0x88   : > { %896 = vmatprep.subr.bf16.mxu1 %v895_v55  ;;  %954 = vmatpush1.bf16.msra.mxu0 %v953_v61  ;;  %v240_v50 = vld [vmem:[#allocation4 + $0x48] sm:$0xff]  ;;  %v253_v51 = vld [vmem:[#allocation4 + $0xb0] sm:$0xff]  ;;  %v239_v52 = vld [vmem:[#allocation4 + $0x40] sm:$0xff] }
  0x89   : > { %956 = vmatprep.subr.bf16.mxu0 %v955_v0  ;;  %v258_v53 = vld [vmem:[#allocation4 + $0xd8] sm:$0xff]  ;;  %v244_v54 = vld [vmem:[#allocation4 + $0x68] sm:$0xff]  ;;  %v257_v55 = vld [vmem:[#allocation4 + $0xd0] sm:$0xff] }
  0x8a   : > { %v243_v56 = vld [vmem:[#allocation4 + $0x60] sm:$0xff]  ;;  %v262_v57 = vld [vmem:[#allocation4 + $0xf8] sm:$0xff]  ;;  %v248_v58 = vld [vmem:[#allocation4 + $0x88] sm:$0xff] }
  0x8b   : > { %898 = vmatpush1.bf16.msra.mxu1 %v897_v62  ;;  %v261_v59 = vld [vmem:[#allocation4 + $0xf0] sm:$0xff]  ;;  %v247_v60 = vld [vmem:[#allocation4 + $0x80] sm:$0xff]  ;;  %v266_v61 = vld [vmem:[#allocation4 + $0x118] sm:$0xff] }
  0x8c   : > { %900 = vmatprep.subr.bf16.mxu1 %v899_v3  ;;  %958 = vmatpush1.bf16.msra.mxu0 %v957_v9  ;;  %v252_v62 = vld [vmem:[#allocation4 + $0xa8] sm:$0xff]  ;;  %v265_v63 = vld [vmem:[#allocation4 + $0x110] sm:$0xff]  ;;  %v251_v0 = vld [vmem:[#allocation4 + $0xa0] sm:$0xff] }
  0x8d   : > { %960 = vmatprep.subr.bf16.mxu0 %v959_v11  ;;  %v256_v1 = vld [vmem:[#allocation4 + $0xc8] sm:$0xff]  ;;  %v255_v2 = vld [vmem:[#allocation4 + $0xc0] sm:$0xff] }
  0x8e   : > { %v260_v3 = vld [vmem:[#allocation4 + $0xe8] sm:$0xff]  ;;  %v259_v4 = vld [vmem:[#allocation4 + $0xe0] sm:$0xff] }
  0x8f   : > { %902 = vmatpush1.bf16.msra.mxu1 %v901_v10  ;;  %v264_v5 = vld [vmem:[#allocation4 + $0x108] sm:$0xff]  ;;  %v263_v6 = vld [vmem:[#allocation4 + $0x100] sm:$0xff] }
  0x90   : > { %904 = vmatprep.subr.bf16.mxu1 %v903_v14  ;;  %962 = vmatpush1.bf16.msra.mxu0 %v961_v19 }
  0x93   : > { %906 = vmatpush1.bf16.msra.mxu1 %v905_v20  ;;  %587 = vmatmul.mubr.f32.vlgmr.msra.gmra.mrb[0].mxu0 %v233_v26 }
  0x94   : > { %908 = vmatprep.subr.bf16.mxu1 %v907_v21  ;;  %844 = vmatprep.mubr.msk.f32.mxu0 %vm375_vm1, %v238_v28 }
  0x97   : > { %910 = vmatpush1.bf16.msra.mxu1 %v909_v27  ;;  %593 = vmatmul.mubr.f32.gmra.mrb[2].mxu0 %v237_v34 }
  0x98   : > { %912 = vmatprep.subr.bf16.mxu1 %v911_v29  ;;  %845 = vmatprep.mubr.msk.f32.mxu0 %vm375_vm1, %v242_v36 }
  0x9b   : > { %914 = vmatpush1.bf16.msra.mxu1 %v913_v35  ;;  %599 = vmatmul.mubr.f32.gmra.mrb[4].mxu0 %v241_v40 }
  0x9c   : > { %916 = vmatprep.subr.bf16.mxu1 %v915_v37  ;;  %846 = vmatprep.mubr.msk.f32.mxu0 %vm375_vm1, %v246_v42 }
  0x9f   : > { %918 = vmatpush1.bf16.msra.mxu1 %v917_v41  ;;  %605 = vmatmul.mubr.f32.gmra.mrb[6].mxu0 %v245_v43 }
  0xa0   : > { %847 = vmatprep.mubr.msk.f32.mxu0 %vm375_vm1, %v250_v45 }
  0xa2   : > { %468 = vmatmul.mubr.f32.vlgmr.msra.gmra.mrb[0].mxu1 %v231_v44 }
  0xa3   : > { %473 = vmatprep.mubr.f32.mxu1 %v236_v46  ;;  %611 = vmatmul.mubr.f32.gmra.mrb[8].mxu0 %v249_v47 }
  0xa4   : > { %848 = vmatprep.mubr.msk.f32.mxu0 %vm375_vm1, %v254_v49 }
  0xa6   : > { %474 = vmatmul.mubr.f32.gmra.mrb[2].mxu1 %v235_v48 }
  0xa7   : > { %479 = vmatprep.mubr.f32.mxu1 %v240_v50  ;;  %617 = vmatmul.mubr.f32.gmra.mrb[10].mxu0 %v253_v51 }
  0xa8   : > { %849 = vmatprep.mubr.msk.f32.mxu0 %vm375_vm1, %v258_v53 }
  0xaa   : > { %480 = vmatmul.mubr.f32.gmra.mrb[4].mxu1 %v239_v52 }
  0xab   : > { %485 = vmatprep.mubr.f32.mxu1 %v244_v54  ;;  %623 = vmatmul.mubr.f32.gmra.mrb[12].mxu0 %v257_v55 }
  0xac   : > { %850 = vmatprep.mubr.msk.f32.mxu0 %vm375_vm1, %v262_v57 }
  0xae   : > { %486 = vmatmul.mubr.f32.gmra.mrb[6].mxu1 %v243_v56 }
  0xaf   : > { %491 = vmatprep.mubr.f32.mxu1 %v248_v58  ;;  %629 = vmatmul.mubr.f32.gmra.mrb[14].mxu0 %v261_v59 }
  0xb0   : > { %851 = vmatprep.mubr.msk.f32.mxu0 %vm375_vm1, %v266_v61 }
  0xb2   : > { %492 = vmatmul.mubr.f32.gmra.mrb[8].mxu1 %v247_v60 }
  0xb3   : > { %497 = vmatprep.mubr.f32.mxu1 %v252_v62  ;;  %635 = vmatmul.mubr.f32.gmra.mrb[16].mxu0 %v265_v63 }
  0xb6   : > { %498 = vmatmul.mubr.f32.gmra.mrb[10].mxu1 %v251_v0 }
  0xb7   : > { %503 = vmatprep.mubr.f32.mxu1 %v256_v1 }
  0xba   : > { %504 = vmatmul.mubr.f32.gmra.mrb[12].mxu1 %v255_v2 }
  0xbb   : > { %509 = vmatprep.mubr.f32.mxu1 %v260_v3 }
  0xbe   : > { %510 = vmatmul.mubr.f32.gmra.mrb[14].mxu1 %v259_v4 }
  0xbf   : > { %515 = vmatprep.mubr.f32.mxu1 %v264_v5 }
  0xc2   : > { %516 = vmatmul.mubr.f32.gmra.mrb[16].mxu1 %v263_v6 }
 0x166   : > { %v588_v7 = vpop.f32.mrb[0].mxu0 }
 0x167   : > { %v590_v8 = vpop.f32.mrb[1].mxu0 }
 0x16a   : > { %v594_v9 = vpop.f32.mrb[2].mxu0 }
 0x16b   : > { %v596_v10 = vpop.f32.mrb[3].mxu0 }
 0x16e   : > { %v600_v11 = vpop.f32.mrb[4].mxu0 }
 0x16f   : > { %v602_v12 = vpop.f32.mrb[5].mxu0 }
 0x172   : > { %v606_v13 = vpop.f32.mrb[6].mxu0 }
 0x173   : > { %v608_v15 = vpop.f32.mrb[7].mxu0 }
 0x175   : > { %v469_v14 = vpop.f32.mrb[0].mxu1 }
 0x176   : > { %v589_v16 = vadd.f32 %v588_v7, %v469_v14  ;;  %v471_v17 = vpop.f32.mrb[1].mxu1  ;;  %v612_v20 = vpop.f32.mrb[8].mxu0 }
 0x177   : > { %v591_v18 = vadd.f32 %v590_v8, %v471_v17  ;;  %v614_v24 = vpop.f32.mrb[9].mxu0 }
 0x178   : > { %v705_v19 = vmul.f32 %v589_v16, %v589_v16 }
 0x179   : > { %v475_v21 = vpop.f32.mrb[2].mxu1  ;;  %v650_v22 = vadd.f32 %v591_v18, %v589_v16  ;;  %v706_v23 = vmul.f32 %v591_v18, %v591_v18 }
 0x17a   : > { %v595_v25 = vadd.f32 %v594_v9, %v475_v21  ;;  %v477_v26 = vpop.f32.mrb[3].mxu1  ;;  %v618_v30 = vpop.f32.mrb[10].mxu0 }
 0x17b   : > { %v597_v27 = vadd.f32 %v596_v10, %v477_v26  ;;  %651 = vadd.xlane.f32.xlu0 %v650_v22  ;;  %v723_v28 = vadd.f32 %v706_v23, %v705_v19  ;;  %v620_v34 = vpop.f32.mrb[11].mxu0 }
 0x17c   : > { %v707_v29 = vmul.f32 %v595_v25, %v595_v25 }
 0x17d   : > { %v708_v31 = vmul.f32 %v597_v27, %v597_v27  ;;  %724 = vadd.xlane.f32.xlu1 %v723_v28  ;;  %v481_v32 = vpop.f32.mrb[4].mxu1  ;;  %v653_v33 = vadd.f32 %v597_v27, %v595_v25 }
 0x17e   : > { %v601_v35 = vadd.f32 %v600_v11, %v481_v32  ;;  %v483_v36 = vpop.f32.mrb[5].mxu1  ;;  %v624_v40 = vpop.f32.mrb[12].mxu0 }
 0x17f   : > { %v603_v37 = vadd.f32 %v602_v12, %v483_v36  ;;  %654 = vadd.xlane.f32.xlu0 %v653_v33  ;;  %v726_v38 = vadd.f32 %v708_v31, %v707_v29  ;;  %v626_v44 = vpop.f32.mrb[13].mxu0  ;;  %v641_v33 = vld [vmem:[%s1669_s2] sm:$0xff] }
 0x180   : > { %v709_v39 = vmul.f32 %v601_v35, %v601_v35 }
 0x181   : > { %v710_v41 = vmul.f32 %v603_v37, %v603_v37  ;;  %v487_v42 = vpop.f32.mrb[6].mxu1  ;;  %v656_v43 = vadd.f32 %v603_v37, %v601_v35  ;;  %v696_v35 = vld [vmem:[%s1670_s3] sm:$0xff] }
 0x182   : > { %v607_v45 = vadd.f32 %v606_v13, %v487_v42  ;;  %v489_v46 = vpop.f32.mrb[7].mxu1  ;;  %v630_v50 = vpop.f32.mrb[14].mxu0  ;;  %v697_v42 = vld [vmem:[%s1670_s3 + $0x8] sm:$0xff] }
 0x183   : > { %v609_v47 = vadd.f32 %v608_v15, %v489_v46  ;;  %727 = vadd.xlane.f32.xlu0 %v726_v38  ;;  %657 = vadd.xlane.f32.xlu1 %v656_v43  ;;  %v729_v48 = vadd.f32 %v710_v41, %v709_v39  ;;  %v632_v54 = vpop.f32.mrb[15].mxu0  ;;  %v642_v38 = vld [vmem:[%s1669_s2 + $0x8] sm:$0xff]  ;;  %v643_v43 = vld [vmem:[%s1669_s2 + $0x10] sm:$0xff] }
 0x184   : > { %v711_v49 = vmul.f32 %v607_v45, %v607_v45 }
 0x185   : > { %v712_v51 = vmul.f32 %v609_v47, %v609_v47  ;;  %v493_v52 = vpop.f32.mrb[8].mxu1  ;;  %v659_v53 = vadd.f32 %v609_v47, %v607_v45 }
 0x186   : > { %v613_v55 = vadd.f32 %v612_v20, %v493_v52  ;;  %v495_v56 = vpop.f32.mrb[9].mxu1  ;;  %v636_v60 = vpop.f32.mrb[16].mxu0 }
 0x187   : > { %v615_v57 = vadd.f32 %v614_v24, %v495_v56  ;;  %730 = vadd.xlane.f32.xlu1 %v729_v48  ;;  %v732_v58 = vadd.f32 %v712_v51, %v711_v49  ;;  %v638_v0 = vpop.f32.mrb[17].mxu0  ;;  %v698_v48 = vld [vmem:[%s1670_s3 + $0x10] sm:$0xff]  ;;  %v645_v56 = vld [vmem:[%s1669_s2 + $0x20] sm:$0xff] }
 0x188   : > { %v713_v59 = vmul.f32 %v613_v55, %v613_v55 }
 0x189   : > { %v714_v61 = vmul.f32 %v615_v57, %v615_v57  ;;  %733 = vadd.xlane.f32.xlu0 %v732_v58  ;;  %v499_v62 = vpop.f32.mrb[10].mxu1  ;;  %v662_v63 = vadd.f32 %v615_v57, %v613_v55 }
 0x18a   : > { %v619_v1 = vadd.f32 %v618_v30, %v499_v62  ;;  %v501_v2 = vpop.f32.mrb[11].mxu1  ;;  %v701_v62 = vld [vmem:[%s1670_s3 + $0x28] sm:$0xff] }
 0x18b   : > { %v621_v3 = vadd.f32 %v620_v34, %v501_v2  ;;  %660 = vadd.xlane.f32.xlu1 %v659_v53  ;;  %v735_v4 = vadd.f32 %v714_v61, %v713_v59  ;;  %v644_v53 = vld [vmem:[%s1669_s2 + $0x18] sm:$0xff]  ;;  %v700_v59 = vld [vmem:[%s1670_s3 + $0x20] sm:$0xff] }
 0x18c   : > { %v715_v5 = vmul.f32 %v619_v1, %v619_v1 }
 0x18d   : > { %v716_v6 = vmul.f32 %v621_v3, %v621_v3  ;;  %663 = vadd.xlane.f32.xlu0 %v662_v63  ;;  %v505_v7 = vpop.f32.mrb[12].mxu1  ;;  %v665_v8 = vadd.f32 %v621_v3, %v619_v1  ;;  %v646_v1 = vld [vmem:[%s1669_s2 + $0x28] sm:$0xff] }
 0x18e   : > { %v625_v9 = vadd.f32 %v624_v40, %v505_v7  ;;  %v507_v10 = vpop.f32.mrb[13].mxu1  ;;  %v702_v7 = vld [vmem:[%s1670_s3 + $0x30] sm:$0xff] }
 0x18f   : > { %v627_v11 = vadd.f32 %v626_v44, %v507_v10  ;;  %736 = vadd.xlane.f32.xlu1 %v735_v4  ;;  %v738_v12 = vadd.f32 %v716_v6, %v715_v5  ;;  %v647_v4 = vld [vmem:[%s1669_s2 + $0x30] sm:$0xff] }
 0x190   : > { %v717_v13 = vmul.f32 %v625_v9, %v625_v9 }
 0x191   : > { %v718_v14 = vmul.f32 %v627_v11, %v627_v11  ;;  %739 = vadd.xlane.f32.xlu0 %v738_v12  ;;  %v511_v15 = vpop.f32.mrb[14].mxu1  ;;  %v668_v16 = vadd.f32 %v627_v11, %v625_v9  ;;  %v648_v11 = vld [vmem:[%s1669_s2 + $0x38] sm:$0xff]  ;;  %v649_v12 = vld [vmem:[%s1669_s2 + $0x40] sm:$0xff] }
 0x192   : > { %v631_v17 = vadd.f32 %v630_v50, %v511_v15  ;;  %v513_v18 = vpop.f32.mrb[15].mxu1  ;;  %v699_v50 = vld [vmem:[%s1670_s3 + $0x18] sm:$0xff] }
 0x193   : > { %v633_v19 = vadd.f32 %v632_v54, %v513_v18  ;;  %666 = vadd.xlane.f32.xlu1 %v665_v8  ;;  %v741_v20 = vadd.f32 %v718_v14, %v717_v13  ;;  %v703_v18 = vld [vmem:[%s1670_s3 + $0x38] sm:$0xff] }
 0x194   : > { %v719_v21 = vmul.f32 %v631_v17, %v631_v17 }
 0x195   : > { %v720_v22 = vmul.f32 %v633_v19, %v633_v19  ;;  %669 = vadd.xlane.f32.xlu0 %v668_v16  ;;  %v517_v23 = vpop.f32.mrb[16].mxu1  ;;  %v671_v24 = vadd.f32 %v633_v19, %v631_v17  ;;  %v704_v17 = vld [vmem:[%s1670_s3 + $0x40] sm:$0xff] }
 0x196   : > { %v637_v25 = vadd.f32 %v636_v60, %v517_v23  ;;  %v519_v26 = vpop.f32.mrb[17].mxu1 }
 0x197   : > { %v639_v27 = vadd.f32 %v638_v0, %v519_v26  ;;  %742 = vadd.xlane.f32.xlu1 %v741_v20  ;;  %v744_v28 = vadd.f32 %v720_v22, %v719_v21 }
 0x198   : > { %v721_v29 = vmul.f32 %v637_v25, %v637_v25 }
 0x199   : > { %v722_v30 = vmul.f32 %v639_v27, %v639_v27  ;;  %v674_v31 = vadd.f32 %v639_v27, %v637_v25 }
 0x19b   : > { %672 = vadd.xlane.f32.xlu1 %v671_v24  ;;  %675 = vadd.xlane.f32.xlu0 %v674_v31  ;;  %v747_v32 = vadd.f32 %v722_v30, %v721_v29 }
 0x19f   : > { %748 = vadd.xlane.f32.xlu1 %v747_v32  ;;  %745 = vadd.xlane.f32.xlu0 %v744_v28 }
 0x208   : > { %v652_v34 = vpop.xlane.xlu0 %651 }
 0x209   : > { %v677_v36 = vadd.f32 %v652_v34, %v641_v33 }
 0x20a   : > { %v725_v37 = vpop.xlane.xlu1 %724 }
 0x20b   : > { %687 = vst.msk [vmem:[%s1669_s2] sm:$0xff] %vm686_vm2, %v677_v36  ;;  %v750_v39 = vadd.f32 %v725_v37, %v696_v35 }
 0x20c   : > { %v655_v40 = vpop.xlane.xlu0 %654 }
 0x20d   : > { %759 = vst.msk [vmem:[%s1670_s3] sm:$0xff] %vm686_vm2, %v750_v39  ;;  %v678_v41 = vadd.f32 %v655_v40, %v642_v38 }
 0x20f   : > { %688 = vst.msk [vmem:[%s1669_s2 + $0x8] sm:$0xff] %vm686_vm2, %v678_v41 }
 0x210   : > { %v728_v44 = vpop.xlane.xlu0 %727  ;;  %v658_v45 = vpop.xlane.xlu1 %657 }
 0x211   : > { %v751_v46 = vadd.f32 %v728_v44, %v697_v42  ;;  %v679_v47 = vadd.f32 %v658_v45, %v643_v43 }
 0x213   : > { %760 = vst.msk [vmem:[%s1670_s3 + $0x8] sm:$0xff] %vm686_vm2, %v751_v46  ;;  %689 = vst.msk [vmem:[%s1669_s2 + $0x10] sm:$0xff] %vm686_vm2, %v679_v47 }
 0x214   : > { %v731_v49 = vpop.xlane.xlu1 %730 }
 0x215   : > { %v752_v51 = vadd.f32 %v731_v49, %v698_v48 }
 0x216   : > { %v734_v52 = vpop.xlane.xlu0 %733 }
 0x217   : > { %761 = vst.msk [vmem:[%s1670_s3 + $0x10] sm:$0xff] %vm686_vm2, %v752_v51  ;;  %v753_v54 = vadd.f32 %v734_v52, %v699_v50 }
 0x218   : > { %v661_v55 = vpop.xlane.xlu1 %660 }
 0x219   : > { %762 = vst.msk [vmem:[%s1670_s3 + $0x18] sm:$0xff] %vm686_vm2, %v753_v54  ;;  %v680_v57 = vadd.f32 %v661_v55, %v644_v53 }
 0x21a   : > { %v664_v58 = vpop.xlane.xlu0 %663 }
 0x21b   : > { %690 = vst.msk [vmem:[%s1669_s2 + $0x18] sm:$0xff] %vm686_vm2, %v680_v57  ;;  %v681_v60 = vadd.f32 %v664_v58, %v645_v56 }
 0x21c   : > { %v737_v61 = vpop.xlane.xlu1 %736 }
 0x21d   : > { %691 = vst.msk [vmem:[%s1669_s2 + $0x20] sm:$0xff] %vm686_vm2, %v681_v60  ;;  %v754_v63 = vadd.f32 %v737_v61, %v700_v59 }
 0x21e   : > { %v740_v0 = vpop.xlane.xlu0 %739 }
 0x21f   : > { %763 = vst.msk [vmem:[%s1670_s3 + $0x20] sm:$0xff] %vm686_vm2, %v754_v63  ;;  %v755_v2 = vadd.f32 %v740_v0, %v701_v62 }
 0x220   : > { %v667_v3 = vpop.xlane.xlu1 %666 }
 0x221   : > { %764 = vst.msk [vmem:[%s1670_s3 + $0x28] sm:$0xff] %vm686_vm2, %v755_v2  ;;  %v682_v5 = vadd.f32 %v667_v3, %v646_v1 }
 0x222   : > { %v670_v6 = vpop.xlane.xlu0 %669 }
 0x223   : > { %692 = vst.msk [vmem:[%s1669_s2 + $0x28] sm:$0xff] %vm686_vm2, %v682_v5  ;;  %v683_v8 = vadd.f32 %v670_v6, %v647_v4 }
 0x224   : > { %v743_v9 = vpop.xlane.xlu1 %742 }
 0x225   : > { %693 = vst.msk [vmem:[%s1669_s2 + $0x30] sm:$0xff] %vm686_vm2, %v683_v8  ;;  %v756_v10 = vadd.f32 %v743_v9, %v702_v7 }
 0x227   : > { %765 = vst.msk [vmem:[%s1670_s3 + $0x30] sm:$0xff] %vm686_vm2, %v756_v10 }
 0x228   : > { %v673_v13 = vpop.xlane.xlu1 %672  ;;  %v676_v14 = vpop.xlane.xlu0 %675 }
 0x229   : > { %v684_v15 = vadd.f32 %v673_v13, %v648_v11  ;;  %v685_v16 = vadd.f32 %v676_v14, %v649_v12 }
 0x22b   : > { %694 = vst.msk [vmem:[%s1669_s2 + $0x38] sm:$0xff] %vm686_vm2, %v684_v15  ;;  %695 = vst.msk [vmem:[%s1669_s2 + $0x40] sm:$0xff] %vm686_vm2, %v685_v16 }
 0x22c   : > { %v749_v19 = vpop.xlane.xlu1 %748  ;;  %v746_v20 = vpop.xlane.xlu0 %745 }
 0x22d   : > { %v758_v21 = vadd.f32 %v749_v19, %v704_v17  ;;  %v757_v22 = vadd.f32 %v746_v20, %v703_v18 }
 0x22f   : > { %767 = vst.msk [vmem:[%s1670_s3 + $0x40] sm:$0xff] %vm686_vm2, %v758_v21  ;;  %766 = vst.msk [vmem:[%s1670_s3 + $0x38] sm:$0xff] %vm686_vm2, %v757_v22 }
 0x230 PF: > { %s18_s17 = sadd.s32 1, %s1167_s17   ;;  %s1683_s12 = smov %s1151_s13 }
 0x231   : > { %p15_p1 = scmp.ge.s32.totalorder %s18_s17, 4   ;;  %s1684_s13 = smov %s1155_s14 }
 0x232   : > { %s1685_s14 = smov %s1282_s23  ;;  %s1686_s15 = smov %s1163_s16 }
 0x233   : > { %s1687_s16 = smov %s1689_s25  ;;  %17 = sbr.rel (!%p15_p1) target bundleno = 5 (0x5), region = 80 }
 0x23a   :  { %785 = vsyncpa [#allocation3], 1 }
 0x23b   :  { %787 = vsyncpa [#allocation3 + $0x1], 1 }
 0x23c   :  { %788 = vsyncpa [#allocation5], 1 }

</bundles_post_ra>
